<compile_context>
chip_gen: v7x
topology: tpu7x:2x2x1
jax: 0.10.0
libtpu: 0.0.40
codegen_flags: <defaults>
</compile_context>

<pallas_src>
import math
import functools

import jax
import jax.numpy as jnp
from jax.experimental import pallas as pl
from jax.experimental.pallas import tpu as pltpu

SUBLANE = 8


def _round_up(x, m):
    return ((x + m - 1) // m) * m


def _leaky_relu(x, slope):
    return jnp.where(x >= 0, x, slope * x)


# ----------------------------------------------------------------------------
# Fused Pallas kernel: entire SCM forward in one kernel body
# ----------------------------------------------------------------------------
def _make_scm_kernel(num_w_layers, use_act, neg_slope):
    """y = v( g( w_MLP(x) ) ); the 1/sqrt(N) scale is pre-folded into the last
    w-layer weight.  All matmuls accumulate in f32 on the MXU."""

    def kernel(*refs):
        x_ref = refs[0]
        w_refs = refs[1:1 + num_w_layers]
        v_ref = refs[1 + num_w_layers]
        o_ref = refs[2 + num_w_layers]

        h = x_ref[...]
        # self.w : MLP built by make_mlp(act=g) — activation between layers,
        # none after the last layer.
        for li in range(num_w_layers):
            h = jnp.dot(h, w_refs[li][...], preferred_element_type=jnp.float32)
            if use_act and li < num_w_layers - 1:
                h = _leaky_relu(h, neg_slope)
        # hidden_units = g(self.w(x) / sqrt(self.N))   (scale folded into weights)
        if use_act:
            h = _leaky_relu(h, neg_slope)
        # y = self.v(hidden_units)
        o_ref[...] = jnp.dot(
            h, v_ref[...], preferred_element_type=jnp.float32
        ).astype(o_ref.dtype)

    return kernel


# ----------------------------------------------------------------------------
# Batch-tile selection: big tiles, >=2 grid steps (v7x 2 TCs), minimal waste
# ----------------------------------------------------------------------------
def _choose_bm(B, block_m):
    if B < 2 * SUBLANE:
        # Too small to split legally: single full-array block (exempt shape).
        return B, 1
    n_blocks = max(2, pl.cdiv(B, block_m))          # >=2 so both v7x TCs get work
    bm = _round_up(pl.cdiv(B, n_blocks), SUBLANE)   # minimal ragged waste
    grid_m = pl.cdiv(B, bm)                         # last block may be ragged
    return bm, grid_m


# ----------------------------------------------------------------------------
# Wrapper: single fused pallas_call, no host-side padding
# ----------------------------------------------------------------------------
def scm_forward(x, w_list, v_w, *, use_act, neg_slope, block_m=2048):
    """x: (B, N) f32.  w_list: tuple of unpadded (din, dout) weights with the
    1/sqrt(N) scale folded into the last one.  v_w: unpadded (v_in, out_dim)."""
    B, N = x.shape
    out_dim = v_w.shape[1]

    bm, grid_m = _choose_bm(B, block_m)
    kernel = _make_scm_kernel(len(w_list), use_act, neg_slope)

    # x: batch tiled; feature dim = full array dim (no 128-lane padding needed).
    in_specs = [pl.BlockSpec((bm, N), lambda i: (i, 0))]
    # Weights: full-array blocks, VMEM-resident across the grid.
    for w in w_list:
        in_specs.append(pl.BlockSpec(w.shape, lambda i: (0, 0)))
    in_specs.append(pl.BlockSpec(v_w.shape, lambda i: (0, 0)))

    y = pl.pallas_call(
        kernel,
        out_shape=jax.ShapeDtypeStruct((B, out_dim), jnp.float32),
        grid=(grid_m,),
        in_specs=in_specs,
        # Output stored at its real width (full-array-dim exemption) — no
        # 128x-inflated writeback, no post-kernel slice of a padded array.
        out_specs=pl.BlockSpec((bm, out_dim), lambda i: (i, 0)),
        compiler_params=pltpu.CompilerParams(
            dimension_semantics=("parallel",)),
    )(x, *w_list, v_w)

    return jnp.squeeze(y)          # mirrors PyTorch `.squeeze()`


# ----------------------------------------------------------------------------
# Deterministic parameter construction (bias=False, as in the module default)
# ----------------------------------------------------------------------------
def init_scm_params(key, N, K, out_dim=1, g_is_identity=False, neg_slope=0.01):
    """Returns (kernel_args, reference_args, kernel_cfg, ref_cfg)."""
    K = list(K)
    if len(K) == 0:                       # w = Identity; module forces g = Identity, N = 1
        w_dims = []
        eff_N = 1
        v_in = N
        use_act = False
    else:
        w_dims = list(zip([N] + K[:-1], K))
        eff_N = K[-1] if len(K) > 1 else N   # self.N reassigned only when len(K) > 1
        v_in = K[-1]
        use_act = not g_is_identity          # make_mlp's internal act is the same g

    n_scale = 1.0 / math.sqrt(eff_N)
    keys = jax.random.split(key, max(len(w_dims), 1) + 1)

    w_raw, w_fused = [], []
    for i, (din, dout) in enumerate(w_dims):
        w = jax.random.normal(keys[i], (din, dout), jnp.float32) / math.sqrt(din)
        w_raw.append(w)
        # Fold 1/sqrt(self.N) into the LAST w layer (exact: the division sits
        # immediately after that matmul, before g).
        w_fused.append(w * n_scale if i == len(w_dims) - 1 else w)

    v = jax.random.normal(keys[-1], (v_in, out_dim), jnp.float32) / math.sqrt(v_in)

    kernel_cfg = dict(use_act=use_act, neg_slope=neg_slope)
    ref_cfg = dict(n_scale=n_scale, use_act=use_act, neg_slope=neg_slope)
    return (tuple(w_fused), v), (w_raw, v), kernel_cfg, ref_cfg


# ----------------------------------------------------------------------------
# Pure-JAX reference (original module semantics) for correctness checking
# ----------------------------------------------------------------------------
def scm_forward_ref(x, w_raw, v_raw, *, n_scale, use_act, neg_slope):
    hi = jax.lax.Precision.HIGHEST
    h = x
    for i, w in enumerate(w_raw):
        h = jnp.dot(h, w, precision=hi)
        if use_act and i < len(w_raw) - 1:
            h = _leaky_relu(h, neg_slope)
    h = h * n_scale
    if use_act:
        h = _leaky_relu(h, neg_slope)
    return jnp.squeeze(jnp.dot(h, v_raw, precision=hi))


if __name__ == "__main__":
    # Config consistent with the module: x: (bs, P) with bs=8, P=N=16,
    # K=[32, 32] -> self.w is a 2-layer MLP, g=LeakyReLU(0.01), bias=False,
    # out_dim=1, dropout=0.0 (never applied in forward).
    B, N = 8, 16
    K = [32, 32]
    OUT_DIM = 1

    key = jax.random.PRNGKey(0)
    kx, kp = jax.random.split(key)
    x = jax.random.normal(kx, (B, N), jnp.float32)

    (w_fused, v_w), (w_raw, v_raw), cfg, ref_cfg = init_scm_params(
        kp, N, K, out_dim=OUT_DIM)

    fwd = jax.jit(functools.partial(scm_forward, **cfg))

    out = jax.block_until_ready(fwd(x, w_fused, v_w))
    ref = scm_forward_ref(x, w_raw, v_raw, **ref_cfg)
    assert out.shape == (B,), out.shape
    assert bool(jnp.all(jnp.isfinite(out)))
    assert jnp.allclose(out, ref, rtol=1e-4, atol=1e-4), (out, ref)

    # Exercise the multi-block path (>=2 "parallel" grid steps, ragged last
    # block, no host-side padding) with a batch that is not a multiple of 8.
    B2 = 100
    x2 = jax.random.normal(jax.random.PRNGKey(1), (B2, N), jnp.float32)
    out2 = jax.block_until_ready(fwd(x2, w_fused, v_w))
    ref2 = scm_forward_ref(x2, w_raw, v_raw, **ref_cfg)
    assert out2.shape == (B2,), out2.shape
    assert bool(jnp.all(jnp.isfinite(out2)))
    assert jnp.allclose(out2, ref2, rtol=1e-4, atol=1e-4)

    print("KERNEL_OK")
</pallas_src>

<mosaic_0001>
module attributes {stable_mosaic.version = 11 : i64} {
  func.func @kernel(%arg0: i32, %arg1: memref<8x16xf32, #tpu.memory_space<vmem>>, %arg2: memref<16x32xf32, #tpu.memory_space<vmem>>, %arg3: memref<32x32xf32, #tpu.memory_space<vmem>>, %arg4: memref<32x1xf32, #tpu.memory_space<vmem>>, %arg5: memref<8x1xf32, #tpu.memory_space<vmem>>) attributes {dimension_semantics = [#tpu.dimension_semantics<parallel>], iteration_bounds = array<i64: 1>, scalar_prefetch = 0 : i64, scratch_operands = 0 : i64, tpu.core_type = #tpu.core_type<tc>, window_params = [{transform_indices = @transform_0, window_bounds = array<i64: 8, 16>}, {pipeline_mode = #tpu.pipeline_mode<synchronous>, transform_indices = @transform_1, window_bounds = array<i64: 16, 32>}, {pipeline_mode = #tpu.pipeline_mode<synchronous>, transform_indices = @transform_2, window_bounds = array<i64: 32, 32>}, {pipeline_mode = #tpu.pipeline_mode<synchronous>, transform_indices = @transform_3, window_bounds = array<i64: 32, 1>}, {transform_indices = @transform_4, window_bounds = array<i64: 8, 1>}]} {
    %c0 = arith.constant 0 : index
    %c0_0 = arith.constant 0 : index
    %0 = vector.load %arg1[%c0, %c0_0] : memref<8x16xf32, #tpu.memory_space<vmem>>, vector<8x16xf32>
    %c0_1 = arith.constant 0 : index
    %c0_2 = arith.constant 0 : index
    %1 = vector.load %arg2[%c0_1, %c0_2] : memref<16x32xf32, #tpu.memory_space<vmem>>, vector<16x32xf32>
    %cst = arith.constant dense<0.000000e+00> : vector<8x32xf32>
    %2 = tpu.matmul %0, %1, %cst {dimension_numbers = #tpu.dot_dimension_numbers<[1], [0], [0], [1], [0, 0, 1, 1], [], []>} : vector<8x16xf32>, vector<16x32xf32>, vector<8x32xf32> -> vector<8x32xf32>
    %cst_3 = arith.constant 0.000000e+00 : f32
    %3 = vector.broadcast %cst_3 : f32 to vector<8x32xf32>
    %4 = arith.cmpf oge, %2, %3 : vector<8x32xf32>
    %cst_4 = arith.constant 0.00999999977 : f32
    %5 = vector.broadcast %cst_4 : f32 to vector<8x32xf32>
    %6 = arith.mulf %5, %2 : vector<8x32xf32>
    %7 = arith.select %4, %2, %6 : vector<8x32xi1>, vector<8x32xf32>
    %c0_5 = arith.constant 0 : index
    %c0_6 = arith.constant 0 : index
    %8 = vector.load %arg3[%c0_5, %c0_6] : memref<32x32xf32, #tpu.memory_space<vmem>>, vector<32x32xf32>
    %cst_7 = arith.constant dense<0.000000e+00> : vector<8x32xf32>
    %9 = tpu.matmul %7, %8, %cst_7 {dimension_numbers = #tpu.dot_dimension_numbers<[1], [0], [0], [1], [0, 0, 1, 1], [], []>} : vector<8x32xf32>, vector<32x32xf32>, vector<8x32xf32> -> vector<8x32xf32>
    %cst_8 = arith.constant 0.000000e+00 : f32
    %10 = vector.broadcast %cst_8 : f32 to vector<8x32xf32>
    %11 = arith.cmpf oge, %9, %10 : vector<8x32xf32>
    %cst_9 = arith.constant 0.00999999977 : f32
    %12 = vector.broadcast %cst_9 : f32 to vector<8x32xf32>
    %13 = arith.mulf %12, %9 : vector<8x32xf32>
    %14 = arith.select %11, %9, %13 : vector<8x32xi1>, vector<8x32xf32>
    %c0_10 = arith.constant 0 : index
    %c0_11 = arith.constant 0 : index
    %15 = vector.load %arg4[%c0_10, %c0_11] : memref<32x1xf32, #tpu.memory_space<vmem>>, vector<32x1xf32>
    %cst_12 = arith.constant dense<0.000000e+00> : vector<8x1xf32>
    %16 = tpu.matmul %14, %15, %cst_12 {dimension_numbers = #tpu.dot_dimension_numbers<[1], [0], [0], [1], [0, 0, 1, 1], [], []>} : vector<8x32xf32>, vector<32x1xf32>, vector<8x1xf32> -> vector<8x1xf32>
    %c0_13 = arith.constant 0 : index
    %c0_14 = arith.constant 0 : index
    %17 = vector.load %arg5[%c0_13, %c0_14] : memref<8x1xf32, #tpu.memory_space<vmem>>, vector<8x1xf32>
    tpu.vector_store %arg5[%c0_13, %c0_14], %16 {strides = array<i32>} : memref<8x1xf32, #tpu.memory_space<vmem>>, vector<8x1xf32>,
    return
  }
  func.func @transform_0(%arg0: i32) -> (i32, i32) {
    %c0_i32 = arith.constant 0 : i32
    %c0_i32_0 = arith.constant 0 : i32
    return %arg0, %c0_i32 : i32, i32
  }
  func.func @transform_1(%arg0: i32) -> (i32, i32) {
    %c0_i32 = arith.constant 0 : i32
    %c0_i32_0 = arith.constant 0 : i32
    %c0_i32_1 = arith.constant 0 : i32
    return %c0_i32, %c0_i32_0 : i32, i32
  }
  func.func @transform_2(%arg0: i32) -> (i32, i32) {
    %c0_i32 = arith.constant 0 : i32
    %c0_i32_0 = arith.constant 0 : i32
    %c0_i32_1 = arith.constant 0 : i32
    return %c0_i32, %c0_i32_0 : i32, i32
  }
  func.func @transform_3(%arg0: i32) -> (i32, i32) {
    %c0_i32 = arith.constant 0 : i32
    %c0_i32_0 = arith.constant 0 : i32
    %c0_i32_1 = arith.constant 0 : i32
    return %c0_i32, %c0_i32_0 : i32, i32
  }
  func.func @transform_4(%arg0: i32) -> (i32, i32) {
    %c0_i32 = arith.constant 0 : i32
    %c0_i32_0 = arith.constant 0 : i32
    return %arg0, %c0_i32 : i32, i32
  }
}

</mosaic_0001>

<bundles_post_ra>
// kernel: scm_forward.1
= control target key start
LH: loop header
LB: loop body
LE: loop exit
PB: predicated region body
PF: predicated region fallthrough
CT: control target
= control target key end

     0   :  { %9 = vsyncpa [#allocation3], 0  ;;  %s366_s15 = smov [#allocation2]   ;;  %s442_s0 = inlined_call_operand.vmem [shape: f32[8,16], index: 0, kind: input, shape index: {}]   ;;  %s443_s1 = inlined_call_operand.hbm [shape: f32[16,32], index: 1, kind: input, shape index: {}]   ;;  %s444_s2 = inlined_call_operand.vmem [shape: f32[32,32], index: 2, kind: input, shape index: {}]   ;;  %s445_s3 = inlined_call_operand.vmem [shape: f32[32,1], index: 3, kind: input, shape index: {}]   ;;  %s446_s4 = inlined_call_operand.vmem [shape: f32[8,1], index: 4, kind: output, shape index: {}]  }
   0x1   :  { %s17_s16 = sshll.u32 %s366_s15, 4  ;;  %s342_s19 = scalar_lea.hbm %s443_s1, 256  ;;  %s18_s16 = int_to_ptr.vmem [resolvable:$true] %s17_s16 }
   0x2   :  { %p343_p0 = scmp.ne.s32.totalorder %s443_s1, %s342_s19  ;;  %p346_p1 = scmp.lt.u32.totalorder %s342_s19, %s443_s1 }
   0x4   :  { %p348_p2 = pnand %p346_p1, %p343_p0 }
   0x6   :  { %351 = shalt.err (!%p348_p2)
}
   0x7   :  { %s352_s24 = scalar_lea.vmem %s18_s16, 256  ;;  %p357_p4 = scmp.lt.s32.totalorder %s18_s16, %s18_s16 }
   0x8   :  { %p353_p3 = scmp.ne.s32.totalorder %s18_s16, %s352_s24  ;;  %p358_p5 = scmp.lt.s32.totalorder %s352_s24, %s352_s24 }
   0xa   :  { %p359_p6 = por %p358_p5, %p357_p4 }
   0xc   :  { %p360_p7 = pnand %p359_p6, %p353_p3 }
   0xe   :  { %363 = shalt.err (!%p360_p7)
}
   0xf   :  { %s367_s25 = smov 128   ;;  %s368_s26 = smov 8  }
  0x10   :  { %23 = dma.hbm_to_vmem [thread:$0]  %s443_s1, 256, %s18_s16, [#allocation3], %s367_s25, %s367_s25, %s368_s26  }
  0x11   :  { %364 = dma.done.wait [#allocation3], 256  }
  0x12   :  { %365 = vsyncadd [#allocation3], 4294967040  ;;  %v369_v0 = vmov 0.0|0.0   ;;  %vm370_vm0 = vmmov 0   ;;  %v371_v1 = vmov 0.0   ;;  %v32_v2 = vld [vmem:[#allocation2] sm:$0xff] }
  0x13   :  { %321 = vmatprep.subr.bf16.mxu0 %v369_v0  ;;  %296 = vmatprep.mubr.msk.f32.mxu0 %vm370_vm0, %v371_v1  ;;  %v33_v3 = vld [vmem:[#allocation2 + $0x8] sm:$0xff]  ;;  %v111_v5 = vld [vmem:[%s444_s2] sm:$0xff]  ;;  %vm34_vm1 = vcmask 130048   ;;  %v113_v9 = vld [vmem:[%s444_s2 + $0x10] sm:$0xff]  ;;  %vm115_vm3 = vcmask 261120   ;;  %vm269_vm5 = vcmask 7168  }
  0x14   :  { %324 = vmatprep.subr.bf16.mxu1 %v369_v0  ;;  %307 = vmatprep.mubr.msk.f32.mxu1 %vm370_vm0, %v371_v1  ;;  %v322_v4 = vpack.c.bf16 %v33_v3, %v32_v2  ;;  %v112_v6 = vld [vmem:[%s444_s2 + $0x8] sm:$0xff]  ;;  %v31_v8 = vld [vmem:[%s442_s0] sm:$0xff]  ;;  %v114_v10 = vld [vmem:[%s444_s2 + $0x18] sm:$0xff] }
  0x15   :  { %v325_v7 = vpack.c.bf16 %v112_v6, %v111_v5  ;;  %v328_v11 = vpack.c.bf16 %v114_v10, %v113_v9  ;;  %v192_v12 = vld [vmem:[%s445_s3] sm:$0xff]  ;;  %v193_v13 = vld [vmem:[%s445_s3 + $0x8] sm:$0xff]  ;;  %v194_v19 = vld [vmem:[%s445_s3 + $0x10] sm:$0xff] }
  0x16   :  { %323 = vmatpush3.bf16.msra.mxu0 %v322_v4  ;;  %v331_v14 = vpack.c.bf16 %v193_v13, %v192_v12  ;;  %v195_v20 = vld [vmem:[%s445_s3 + $0x18] sm:$0xff] }
  0x17   :  { %326 = vmatpush3.bf16.msra.mxu1 %v325_v7  ;;  %330 = vmatprep.subr.bf16.mxu0 %v369_v0  ;;  %v334_v21 = vpack.c.bf16 %v195_v20, %v194_v19 }
  0x18   :  { %327 = vmatprep.subr.bf16.mxu1 %v369_v0 }
  0x19   :  { %297 = vmatmul.mubr.msk.f32.vlgmr.msra.gmra.mrb[0].mxu0 %vm34_vm1, %v31_v8 }
  0x1a   :  { %318 = vmatprep.mubr.msk.f32.mxu0 %vm370_vm0, %v371_v1  ;;  %332 = vmatpush3.bf16.msra.mxu0 %v331_v14 }
  0x1b   :  { %329 = vmatpush3.bf16.msra.mxu1 %v328_v11  ;;  %333 = vmatprep.subr.bf16.mxu0 %v369_v0 }
  0x1e   :  { %335 = vmatpush3.bf16.msra.mxu0 %v334_v21 }
  0xec   :  { %v104_v15 = vpop.f32.mrb[0].mxu0 }
  0xed   :  { %vm108_vm2 = vcmp.ge.f32.partialorder %v104_v15, 0.0  ;;  %v109_v16 = vmul.f32 0.01, %v104_v15  ;;  %v298_v17 = vpop.f32.mrb[1].mxu0 }
  0xef   :  { %v110_v18 = vsel %vm108_vm2, %v104_v15, %v109_v16 }
  0xf0   :  { %308 = vmatmul.mubr.msk.f32.vlgmr.msra.gmra.mrb[0].mxu1 %vm115_vm3, %v110_v18 }
 0x1c3   :  { %v185_v22 = vpop.f32.mrb[0].mxu1 }
 0x1c4   :  { %vm189_vm4 = vcmp.ge.f32.partialorder %v185_v22, 0.0  ;;  %v190_v23 = vmul.f32 0.01, %v185_v22  ;;  %v309_v24 = vpop.f32.mrb[1].mxu1 }
 0x1c6   :  { %v191_v25 = vsel %vm189_vm4, %v185_v22, %v190_v23 }
 0x1c7   :  { %319 = vmatmul.mubr.msk.f32.vlgmr.msra.gmra.mrb[2].mxu0 %vm115_vm3, %v191_v25 }
 0x29a   :  { %v265_v26 = vpop.f32.mrb[2].mxu0 }
 0x29b   :  { %270 = vst.msk [vmem:[%s446_s4] sm:$0xff] %vm269_vm5, %v265_v26  ;;  %v320_v27 = vpop.f32.mrb[3].mxu0 }
 0x29c   :  { %275 = vsyncpa [#allocation3], 1 }

</bundles_post_ra>
